<compile_context>
chip_gen: v7x
topology: tpu7x:2x2x1
jax: 0.10.0
libtpu: 0.0.40
codegen_flags: <defaults>
</compile_context>

<pallas_src>
import math

import jax
import jax.numpy as jnp
from jax.experimental import pallas as pl
from jax.experimental.pallas import tpu as pltpu

LANE = 128                       # lane width of a vreg
_HALF_PI = math.pi / 2.0
_INV_2_24 = 1.0 / float(1 << 24)
_GOLDEN_I32 = -1640531527        # 0x9E3779B9 as int32 (two's complement)


def _round_up(x, m):
    return ((x + m - 1) // m) * m


def _rand_gps_kernel(seed_ref, out_ref):
    """Generate uniform[-1,1) randoms and apply the UnormGPS scale.

    seed_ref : SMEM (1,) int32                  -- PRNG seed
    out_ref  : VMEM (block_rows, 128) float32   -- lane-dense packed gps slab
                 flat index = row*128 + lane = b*num_output + j
    """
    block_rows, lanes = out_ref.shape

    # Global flat element index of every slot in this tile.
    row = jax.lax.broadcasted_iota(jnp.int32, (block_rows, lanes), 0)
    lane = jax.lax.broadcasted_iota(jnp.int32, (block_rows, lanes), 1)
    flat = (pl.program_id(0) * block_rows + row) * lanes + lane

    # Counter-based PRNG: lowbias32/splitmix-style mixer on (flat, seed).
    # Pure integer xor/shift/mul -> lowers on Mosaic without hardware PRNG.
    x = (flat + seed_ref[0] * jnp.int32(_GOLDEN_I32)).astype(jnp.uint32)
    x = x ^ (x >> jnp.uint32(16))
    x = x * jnp.uint32(0x7FEB352D)
    x = x ^ (x >> jnp.uint32(15))
    x = x * jnp.uint32(0x846CA68B)
    x = x ^ (x >> jnp.uint32(16))

    # Top 24 bits -> integer in [0, 2^24).  Fold  u01 = u24/2^24,
    # gps = u01*2 - 1  (already in [-1,1), so the clamp is a no-op), and the
    # UnormGPS scale (pi/2 for lat lanes, pi for lon lanes) into mul + sub:
    #   out = u24 * (2*scale/2^24) - scale
    u24 = (x >> jnp.uint32(8)).astype(jnp.int32).astype(jnp.float32)
    odd = (lane & 1).astype(jnp.float32)          # 0 -> lat lane, 1 -> lon lane
    scale = _HALF_PI + odd * _HALF_PI             # pi/2 (lat) or pi (lon)
    out_ref[...] = u24 * (scale * jnp.float32(2.0 * _INV_2_24)) - scale


def random_gps_head(x, num_output=2, seed=0):
    """Pallas equivalent of Random(num_output).forward(x)['gps'].

    Args:
      x: jnp.ndarray of features, NCHW; only x.shape[0] (batch) is used.
      num_output: number of GPS outputs (UnormGPS defines exactly 2: lat, lon).
      seed: integer PRNG seed (torch.rand is nondeterministic; here we seed).
    Returns:
      dict with 'gps': (B, num_output) float32 array, lat in [-pi/2, pi/2),
      lon in [-pi, pi).
    """
    assert num_output == 2, "UnormGPS scales exactly (lat, lon); num_output must be 2"
    B = x.shape[0]

    total = B * num_output
    rows_needed = max(1, -(-total // LANE))
    block_rows = min(512, _round_up(rows_needed, 8))   # <= 256 KiB f32 tile
    rows_padded = _round_up(rows_needed, block_rows)
    grid = (rows_padded // block_rows,)

    seed_arr = jnp.array([seed], dtype=jnp.int32)

    out_padded = pl.pallas_call(
        _rand_gps_kernel,
        out_shape=jax.ShapeDtypeStruct((rows_padded, LANE), jnp.float32),
        grid=grid,
        in_specs=[
            pl.BlockSpec(memory_space=pltpu.SMEM),              # seed scalar
        ],
        out_specs=pl.BlockSpec((block_rows, LANE), lambda i: (i, 0)),
        compiler_params=pltpu.CompilerParams(
            dimension_semantics=("parallel",)),                 # megacore-split rows
    )(seed_arr)

    gps = out_padded.reshape(-1)[:total].reshape(B, num_output)
    return {"gps": gps}


if __name__ == "__main__":
    key = jax.random.PRNGKey(0)
    # Small feature map consistent with an image-feature head input (NCHW).
    x = jax.random.normal(key, (2, 4, 16, 16), dtype=jnp.float32)

    out = random_gps_head(x, num_output=2, seed=0)
    gps = jax.block_until_ready(out["gps"])

    assert gps.shape == (2, 2)
    assert gps.dtype == jnp.float32
    # Range check: lat in [-pi/2, pi/2], lon in [-pi, pi]
    assert bool(jnp.all(jnp.abs(gps[:, 0]) <= math.pi * 0.5 + 1e-6))
    assert bool(jnp.all(jnp.abs(gps[:, 1]) <= math.pi + 1e-6))
    assert bool(jnp.all(jnp.isfinite(gps)))

    print("KERNEL_OK")
</pallas_src>

<mosaic_0001>
module attributes {stable_mosaic.version = 11 : i64} {
  func.func @_rand_gps_kernel(%arg0: i32, %arg1: memref<1xi32, #tpu.memory_space<smem>>, %arg2: memref<8x128xf32, #tpu.memory_space<vmem>>) attributes {dimension_semantics = [#tpu.dimension_semantics<parallel>], iteration_bounds = array<i64: 1>, scalar_prefetch = 0 : i64, scratch_operands = 0 : i64, tpu.core_type = #tpu.core_type<tc>, window_params = [{transform_indices = @transform_0, window_bounds = array<i64: 1>}, {transform_indices = @transform_1, window_bounds = array<i64: 8, 128>}]} {
    %0 = tpu.iota {dimensions = array<i32: 0>} : vector<8x128xi32>
    %1 = tpu.iota {dimensions = array<i32: 1>} : vector<8x128xi32>
    %c8_i32 = arith.constant 8 : i32
    %2 = arith.muli %arg0, %c8_i32 : i32
    %3 = vector.broadcast %2 : i32 to vector<8x128xi32>
    %4 = arith.addi %3, %0 : vector<8x128xi32>
    %c128_i32 = arith.constant 128 : i32
    %5 = vector.broadcast %c128_i32 : i32 to vector<8x128xi32>
    %6 = arith.muli %4, %5 : vector<8x128xi32>
    %7 = arith.addi %6, %1 : vector<8x128xi32>
    %c0 = arith.constant 0 : index
    %8 = memref.load %arg1[%c0] : memref<1xi32, #tpu.memory_space<smem>>
    %c-1640531527_i32 = arith.constant -1640531527 : i32
    %9 = arith.muli %8, %c-1640531527_i32 : i32
    %10 = vector.broadcast %9 : i32 to vector<8x128xi32>
    %11 = arith.addi %7, %10 : vector<8x128xi32>
    %c16_i32 = arith.constant 16 : i32
    %12 = vector.broadcast %c16_i32 : i32 to vector<8x128xi32>
    %13 = arith.shrui %11, %12 : vector<8x128xi32>
    %14 = arith.xori %11, %13 : vector<8x128xi32>
    %c2146121005_i32 = arith.constant 2146121005 : i32
    %15 = vector.broadcast %c2146121005_i32 : i32 to vector<8x128xi32>
    %16 = arith.muli %14, %15 : vector<8x128xi32>
    %c15_i32 = arith.constant 15 : i32
    %17 = vector.broadcast %c15_i32 : i32 to vector<8x128xi32>
    %18 = arith.shrui %16, %17 : vector<8x128xi32>
    %19 = arith.xori %16, %18 : vector<8x128xi32>
    %c-2073254261_i32 = arith.constant -2073254261 : i32
    %20 = vector.broadcast %c-2073254261_i32 : i32 to vector<8x128xi32>
    %21 = arith.muli %19, %20 : vector<8x128xi32>
    %c16_i32_0 = arith.constant 16 : i32
    %22 = vector.broadcast %c16_i32_0 : i32 to vector<8x128xi32>
    %23 = arith.shrui %21, %22 : vector<8x128xi32>
    %24 = arith.xori %21, %23 : vector<8x128xi32>
    %c8_i32_1 = arith.constant 8 : i32
    %25 = vector.broadcast %c8_i32_1 : i32 to vector<8x128xi32>
    %26 = arith.shrui %24, %25 : vector<8x128xi32>
    %27 = arith.sitofp %26 : vector<8x128xi32> to vector<8x128xf32>
    %c1_i32 = arith.constant 1 : i32
    %28 = vector.broadcast %c1_i32 : i32 to vector<8x128xi32>
    %29 = arith.andi %1, %28 : vector<8x128xi32>
    %30 = arith.sitofp %29 : vector<8x128xi32> to vector<8x128xf32>
    %cst = arith.constant 1.57079637 : f32
    %31 = vector.broadcast %cst : f32 to vector<8x128xf32>
    %32 = arith.mulf %30, %31 : vector<8x128xf32>
    %cst_2 = arith.constant 1.57079637 : f32
    %33 = vector.broadcast %cst_2 : f32 to vector<8x128xf32>
    %34 = arith.addf %33, %32 : vector<8x128xf32>
    %cst_3 = arith.constant 1.1920929E-7 : f32
    %35 = vector.broadcast %cst_3 : f32 to vector<8x128xf32>
    %36 = arith.mulf %34, %35 : vector<8x128xf32>
    %37 = arith.mulf %27, %36 : vector<8x128xf32>
    %38 = arith.subf %37, %34 : vector<8x128xf32>
    %c0_4 = arith.constant 0 : index
    %c0_5 = arith.constant 0 : index
    %39 = vector.load %arg2[%c0_4, %c0_5] : memref<8x128xf32, #tpu.memory_space<vmem>>, vector<8x128xf32>
    tpu.vector_store %arg2[%c0_4, %c0_5], %38 {strides = array<i32>} : memref<8x128xf32, #tpu.memory_space<vmem>>, vector<8x128xf32>,
    return
  }
  func.func @transform_0(%arg0: i32) -> i32 {
    %c0_i32 = arith.constant 0 : i32
    %c0_i32_0 = arith.constant 0 : i32
    return %c0_i32 : i32
  }
  func.func @transform_1(%arg0: i32) -> (i32, i32) {
    %c0_i32 = arith.constant 0 : i32
    %c0_i32_0 = arith.constant 0 : i32
    return %arg0, %c0_i32 : i32, i32
  }
}

</mosaic_0001>

<bundles_post_ra>
// kernel: tpu_custom_call.1
= control target key start
LH: loop header
LB: loop body
LE: loop exit
PB: predicated region body
PF: predicated region fallthrough
CT: control target
= control target key end

     0   :  { %v10_v0 = vlaneseq  ;;  %s106_s0 = inlined_call_operand.<no memory space> [shape: s32[1], index: 0, kind: input, shape index: {}]   ;;  %s107_s1 = inlined_call_operand.hbm [shape: f32[8,128], index: 1, kind: output, shape index: {}]  }
   0x1   :  { %7 = vsyncpa [#allocation4], 0  ;;  %s20_s8 = smul.u32 2654435769, %s106_s0  ;;  %s80_s0 = smov [#allocation3]  }
   0x2   :  { %v11_v1 = vshrl.u32 %v10_v0, 7  ;;  %v13_v2 = vand.u32 127, %v10_v0  ;;  %s47_s9 = sshll.u32 %s80_s0, 4  ;;  %s48_s9 = int_to_ptr.vmem [resolvable:$true] %s47_s9 }
   0x3   :  { %v21_v4 = vstv %s20_s8  ;;  %s56_s10 = scalar_lea.vmem %s48_s9, 128  ;;  %p61_p1 = scmp.lt.s32.totalorder %s48_s9, %s48_s9 }
   0x4   :  { %v17_v3 = vmul.u32 128, %v11_v1  ;;  %v33_v8 = vand.u32 1, %v13_v2  ;;  %p57_p0 = scmp.ne.s32.totalorder %s48_s9, %s56_s10  ;;  %p62_p2 = scmp.lt.s32.totalorder %s56_s10, %s56_s10 }
   0x6   :  { %v18_v5 = vadd.s32 %v17_v3, %v13_v2  ;;  %v34_v11 = vcvt.s32.f32 %v33_v8  ;;  %p63_p3 = por %p62_p2, %p61_p1 }
   0x8   :  { %v22_v6 = vadd.s32 %v21_v4, %v18_v5  ;;  %v35_v14 = vmul.f32 1.5707964, %v34_v11  ;;  %p64_p4 = pnand %p63_p3, %p57_p0 }
   0xa   :  { %v23_v7 = vshrl.u32 %v22_v6, 16  ;;  %v36_v17 = vadd.f32 1.5707964, %v35_v14 }
   0xc   :  { %v24_v9 = vxor.u32 %v23_v7, %v22_v6  ;;  %v37_v20 = vmul.f32 1.1920929e-07, %v36_v17 }
   0xe   :  { %v25_v10 = vmul.u32 2146121005, %v24_v9 }
  0x10   :  { %v26_v12 = vshrl.u32 %v25_v10, 15 }
  0x12   :  { %v27_v13 = vxor.u32 %v26_v12, %v25_v10 }
  0x14   :  { %v28_v15 = vmul.u32 2221713035, %v27_v13 }
  0x16   :  { %v29_v16 = vshrl.u32 %v28_v15, 16 }
  0x18   :  { %v30_v18 = vxor.u32 %v29_v16, %v28_v15 }
  0x1a   :  { %v31_v19 = vshrl.u32 %v30_v18, 8 }
  0x1c   :  { %v32_v21 = vcvt.s32.f32 %v31_v19 }
  0x1e   :  { %v38_v22 = vmul.f32 %v37_v20, %v32_v21 }
  0x20   :  { %v39_v23 = vsub.f32 %v38_v22, %v36_v17 }
  0x22   :  { %40 = vst [vmem:[#allocation3] sm:$0xff] %v39_v23 }
  0x23   :  { %67 = shalt.err (!%p64_p4)
}
  0x24   :  { %s68_s13 = scalar_lea.hbm %s107_s1, 128 }
  0x25   :  { %p69_p5 = scmp.ne.s32.totalorder %s107_s1, %s68_s13  ;;  %p72_p6 = scmp.lt.u32.totalorder %s68_s13, %s107_s1 }
  0x27   :  { %p74_p7 = pnand %p72_p6, %p69_p5 }
  0x29   :  { %77 = shalt.err (!%p74_p7)
}
  0x2a   :  { %50 = dma.vmem_to_hbm [thread:$0]  %s48_s9, 128, %s107_s1, [#allocation4]  }
  0x2b   :  { %78 = dma.done.wait [#allocation4], 128  }
  0x2c   :  { %79 = vsyncadd [#allocation4], 4294967168 }
  0x2d   :  { %54 = vsyncpa [#allocation4], 1 }

</bundles_post_ra>
